<compile_context>
chip_gen: v7x
topology: tpu7x:2x2x1
jax: 0.10.0
libtpu: 0.0.40
codegen_flags: <defaults>
</compile_context>

<pallas_src>
import functools

import jax
import jax.numpy as jnp
import numpy as np
from jax.experimental import pallas as pl
from jax.experimental.pallas import tpu as pltpu


def _round_up(x, m):
    return ((x + m - 1) // m) * m


def _glu_block_kernel(x_ref, w_ref, s_ref, o_ref, *, d_pad, approx_gate):
    # x_ref: (TN, D_in)       row tile
    # w_ref: (D_in, 2*d_pad)  folded weight, [a-half | gate-half] lane-packed
    # s_ref: (1, 2*d_pad)     folded affine shift
    # o_ref: (TN, d_pad)
    x = x_ref[...]
    if x.dtype != w_ref.dtype:
        x = x.astype(w_ref.dtype)          # in-tile cast: no extra HBM pass
    y = jnp.dot(x, w_ref[...], preferred_element_type=jnp.float32) + s_ref[...]
    a = y[:, :d_pad]                       # lane-tile-aligned static slices
    g = y[:, d_pad:]
    gate = pl.reciprocal(1.0 + jnp.exp(-g), approx=approx_gate)
    o_ref[...] = (a * gate).astype(o_ref.dtype)


def _vmem_budget_bytes():
    # Generation-aware cap: ~75% of the chip's per-TensorCore VMEM.
    cap = 64 << 20  # conservative default (v7x per-TC VMEM)
    try:
        cap = int(pltpu.get_tpu_info().vmem_capacity_bytes)
    except Exception:
        pass
    return (cap * 3) // 4


def glu_block_prepare(w_t, bias, gamma, beta, running_mean, running_var,
                      *, eps=1e-5, weight_dtype=None):
    """Fold BN(eval) into the linear layer and pack GLU halves lane-aligned.

    Call once per parameter set (inference weights are static) and reuse the
    result across forward calls — this hoists the O(D_in * 2*D_out) prep work
    out of the per-call path.

    w_t: (D_in, 2*D_out) == nn.Linear weight transposed.
    Returns (w_cat, s_cat, d_out, d_pad).
    """
    D_in, two_d_out = w_t.shape
    d_out = two_d_out // 2
    if weight_dtype is None:
        weight_dtype = w_t.dtype

    #   y_bn = (x @ w_t + bias - mean) * scale + beta
    #        = x @ (w_t * scale) + ((bias - mean) * scale + beta)
    scale = (gamma / jnp.sqrt(running_var + eps)).astype(jnp.float32)
    shift = ((bias - running_mean) * scale + beta).astype(jnp.float32)
    w_folded = w_t.astype(jnp.float32) * scale[None, :]

    d_pad = _round_up(d_out, 128)
    w_cat = jnp.zeros((D_in, 2 * d_pad), jnp.float32)
    w_cat = w_cat.at[:, :d_out].set(w_folded[:, :d_out])
    w_cat = w_cat.at[:, d_pad:d_pad + d_out].set(w_folded[:, d_out:])
    s_cat = jnp.zeros((1, 2 * d_pad), jnp.float32)
    s_cat = s_cat.at[0, :d_out].set(shift[:d_out])
    s_cat = s_cat.at[0, d_pad:d_pad + d_out].set(shift[d_out:])
    return w_cat.astype(weight_dtype), s_cat, d_out, d_pad


def glu_block_apply(x, params, *, tile_n=None, approx_gate=False,
                    out_dtype=None):
    """Apply the fused Linear + BN(eval) + GLU kernel to x: (N, D_in)."""
    w_cat, s_cat, d_out, d_pad = params
    N, D_in = x.shape
    assert w_cat.shape == (D_in, 2 * d_pad)
    if out_dtype is None:
        out_dtype = x.dtype

    x_bytes = jnp.dtype(x.dtype).itemsize
    w_bytes = jnp.dtype(w_cat.dtype).itemsize
    o_bytes = jnp.dtype(out_dtype).itemsize
    sublane = max(8, 32 // x_bytes)        # 8 for f32, 16 for bf16, 32 for i8

    # ---- Row tile sized from bytes (~4 MiB per-step tile traffic).
    per_row = D_in * x_bytes + d_pad * o_bytes + 3 * 2 * d_pad * 4
    if tile_n is None:
        tile_n = max(sublane, (4 << 20) // per_row)
        tile_n = min(tile_n, 4096)
        if tile_n >= 512:
            tile_n = (tile_n // 256) * 256
    tile_n = _round_up(max(sublane, min(tile_n, _round_up(N, sublane))), sublane)

    # Give v7x's two TensorCores at least two grid steps whenever N allows it.
    if pl.cdiv(N, tile_n) < 2 and N > sublane:
        tile_n = max(sublane, _round_up(pl.cdiv(N, 2), sublane))

    # ---- Generation-aware VMEM budget; shrink tile_n instead of over-asking.
    budget = _vmem_budget_bytes()
    weight_resident = D_in * 2 * d_pad * w_bytes + 2 * d_pad * 4

    def need(tn, w_buffers):
        return (2 * tn * D_in * x_bytes            # x tiles (double-buffered)
                + w_buffers * weight_resident      # weight + shift
                + 2 * tn * d_pad * o_bytes         # out tiles (double-buffered)
                + 3 * tn * 2 * d_pad * 4)          # live f32 intermediates

    while tile_n > sublane and need(tile_n, 1) > budget:
        tile_n = _round_up(tile_n // 2, sublane)

    grid = (pl.cdiv(N, tile_n),)
    kernel = functools.partial(_glu_block_kernel, d_pad=d_pad,
                               approx_gate=approx_gate)

    def build(single_buffer_weights):
        w_buffers = 1 if single_buffer_weights else 2
        wkw = {"pipeline_mode": pl.Buffered(1)} if single_buffer_weights else {}
        vmem_limit = int(min(budget, max(32 << 20, 2 * need(tile_n, w_buffers))))
        return pl.pallas_call(
            kernel,
            out_shape=jax.ShapeDtypeStruct((N, d_pad), out_dtype),
            grid_spec=pltpu.PrefetchScalarGridSpec(
                num_scalar_prefetch=0,
                grid=grid,
                in_specs=[
                    pl.BlockSpec((tile_n, D_in), lambda i: (i, 0)),
                    pl.BlockSpec((D_in, 2 * d_pad), lambda i: (0, 0), **wkw),
                    pl.BlockSpec((1, 2 * d_pad), lambda i: (0, 0), **wkw),
                ],
                out_specs=pl.BlockSpec((tile_n, d_pad), lambda i: (i, 0)),
            ),
            compiler_params=pltpu.CompilerParams(
                dimension_semantics=("parallel",),
                vmem_limit_bytes=vmem_limit,
            ),
        )

    try:
        out_p = build(True)(x, w_cat, s_cat)
    except Exception:
        # Fallback for JAX versions where pipeline_mode is not accepted on a
        # top-level pallas_call BlockSpec: default (double-buffered) operands.
        out_p = build(False)(x, w_cat, s_cat)

    return out_p if d_pad == d_out else out_p[:, :d_out]


def glu_block(x, w_t, bias, gamma, beta, running_mean, running_var,
              *, eps=1e-5, tile_n=None, approx_gate=False, weight_dtype=None,
              out_dtype=None):
    """One-shot convenience wrapper (prepare + apply)."""
    params = glu_block_prepare(w_t, bias, gamma, beta, running_mean,
                               running_var, eps=eps, weight_dtype=weight_dtype)
    return glu_block_apply(x, params, tile_n=tile_n, approx_gate=approx_gate,
                           out_dtype=out_dtype)


def glu_block_ref(x, w_t, bias, gamma, beta, running_mean, running_var,
                  *, eps=1e-5):
    """Pure-JAX reference of the PyTorch forward (eval mode)."""
    y = x @ w_t + bias
    y = gamma * (y - running_mean) / jnp.sqrt(running_var + eps) + beta
    d_out = y.shape[-1] // 2
    return y[..., :d_out] * jax.nn.sigmoid(y[..., d_out:])


if __name__ == "__main__":
    # Small deterministic setup: batch=20 (ragged, not a multiple of 8),
    # input_dim=16, output_dim=32.
    N, D_IN, D_OUT = 20, 16, 32
    key = jax.random.PRNGKey(0)
    kx, kw, kb, kg, kbt, km, kv = jax.random.split(key, 7)

    x = jax.random.normal(kx, (N, D_IN), dtype=jnp.float32)

    # nn.Linear(input_dim, 2*output_dim): weight (2*D_OUT, D_IN), bias (2*D_OUT,)
    w = jax.random.normal(kw, (2 * D_OUT, D_IN), dtype=jnp.float32) * 0.1
    bias = jax.random.normal(kb, (2 * D_OUT,), dtype=jnp.float32) * 0.1
    w_t = w.T  # (D_IN, 2*D_OUT) kernel layout

    # BatchNorm1d(2*output_dim) parameters and running stats (deterministic).
    gamma = 1.0 + 0.1 * jax.random.normal(kg, (2 * D_OUT,), dtype=jnp.float32)
    beta = 0.1 * jax.random.normal(kbt, (2 * D_OUT,), dtype=jnp.float32)
    running_mean = 0.1 * jax.random.normal(km, (2 * D_OUT,), dtype=jnp.float32)
    running_var = 1.0 + 0.1 * jax.random.uniform(kv, (2 * D_OUT,), dtype=jnp.float32)

    ref = glu_block_ref(x, w_t, bias, gamma, beta, running_mean, running_var)

    # Hoisted parameter preparation (once per weight set), then apply.
    params = glu_block_prepare(w_t, bias, gamma, beta, running_mean, running_var)
    out = jax.block_until_ready(glu_block_apply(x, params))
    np.testing.assert_allclose(np.asarray(out), np.asarray(ref),
                               rtol=1e-5, atol=1e-5)

    # EUP fast-gate path (approx reciprocal): looser tolerance by design.
    out_fast = jax.block_until_ready(glu_block_apply(x, params, approx_gate=True))
    np.testing.assert_allclose(np.asarray(out_fast), np.asarray(ref),
                               rtol=1e-2, atol=1e-2)

    print("KERNEL_OK")
</pallas_src>

<mosaic_0001>
module attributes {stable_mosaic.version = 11 : i64} {
  func.func @_glu_block_kernel(%arg0: i32, %arg1: memref<16x16xf32, #tpu.memory_space<vmem>>, %arg2: memref<16x256xf32, #tpu.memory_space<vmem>>, %arg3: memref<1x256xf32, #tpu.memory_space<vmem>>, %arg4: memref<16x128xf32, #tpu.memory_space<vmem>>) attributes {dimension_semantics = [#tpu.dimension_semantics<parallel>], iteration_bounds = array<i64: 2>, scalar_prefetch = 0 : i64, scratch_operands = 0 : i64, tpu.core_type = #tpu.core_type<tc>, window_params = [{transform_indices = @transform_0, window_bounds = array<i64: 16, 16>}, {pipeline_mode = #tpu.pipeline_mode<synchronous>, transform_indices = @transform_1, window_bounds = array<i64: 16, 256>}, {pipeline_mode = #tpu.pipeline_mode<synchronous>, transform_indices = @transform_2, window_bounds = array<i64: 1, 256>}, {transform_indices = @transform_3, window_bounds = array<i64: 16, 128>}]} {
    %c0 = arith.constant 0 : index
    %c0_0 = arith.constant 0 : index
    %0 = vector.load %arg1[%c0, %c0_0] : memref<16x16xf32, #tpu.memory_space<vmem>>, vector<16x16xf32>
    %c0_1 = arith.constant 0 : index
    %c0_2 = arith.constant 0 : index
    %1 = vector.load %arg2[%c0_1, %c0_2] : memref<16x256xf32, #tpu.memory_space<vmem>>, vector<16x256xf32>
    %cst = arith.constant dense<0.000000e+00> : vector<16x256xf32>
    %2 = tpu.matmul %0, %1, %cst {dimension_numbers = #tpu.dot_dimension_numbers<[1], [0], [0], [1], [0, 0, 1, 1], [], []>} : vector<16x16xf32>, vector<16x256xf32>, vector<16x256xf32> -> vector<16x256xf32>
    %c0_3 = arith.constant 0 : index
    %c0_4 = arith.constant 0 : index
    %3 = vector.load %arg3[%c0_3, %c0_4] : memref<1x256xf32, #tpu.memory_space<vmem>>, vector<1x256xf32>
    %4 = vector.broadcast %3 : vector<1x256xf32> to vector<16x256xf32>
    %5 = arith.addf %2, %4 : vector<16x256xf32>
    %6 = vector.extract_strided_slice %5 {offsets = [0, 0], sizes = [16, 128], strides = [1, 1]} : vector<16x256xf32> to vector<16x128xf32>
    %7 = vector.extract_strided_slice %5 {offsets = [0, 128], sizes = [16, 128], strides = [1, 1]} : vector<16x256xf32> to vector<16x128xf32>
    %cst_5 = arith.constant 0.000000e+00 : f32
    %8 = vector.broadcast %cst_5 : f32 to vector<16x128xf32>
    %9 = arith.subf %8, %7 : vector<16x128xf32>
    %10 = math.exp %9 : vector<16x128xf32>
    %cst_6 = arith.constant 1.000000e+00 : f32
    %11 = vector.broadcast %cst_6 : f32 to vector<16x128xf32>
    %12 = arith.addf %11, %10 : vector<16x128xf32>
    %13 = tpu.reciprocal %12 : vector<16x128xf32> -> vector<16x128xf32>
    %14 = arith.mulf %6, %13 : vector<16x128xf32>
    %c0_7 = arith.constant 0 : index
    %c0_8 = arith.constant 0 : index
    %15 = vector.load %arg4[%c0_7, %c0_8] : memref<16x128xf32, #tpu.memory_space<vmem>>, vector<16x128xf32>
    tpu.vector_store %arg4[%c0_7, %c0_8], %14 {strides = array<i32>} : memref<16x128xf32, #tpu.memory_space<vmem>>, vector<16x128xf32>,
    return
  }
  func.func @transform_0(%arg0: i32) -> (i32, i32) {
    %c0_i32 = arith.constant 0 : i32
    %c0_i32_0 = arith.constant 0 : i32
    return %arg0, %c0_i32 : i32, i32
  }
  func.func @transform_1(%arg0: i32) -> (i32, i32) {
    %c0_i32 = arith.constant 0 : i32
    %c0_i32_0 = arith.constant 0 : i32
    %c0_i32_1 = arith.constant 0 : i32
    return %c0_i32, %c0_i32_0 : i32, i32
  }
  func.func @transform_2(%arg0: i32) -> (i32, i32) {
    %c0_i32 = arith.constant 0 : i32
    %c0_i32_0 = arith.constant 0 : i32
    %c0_i32_1 = arith.constant 0 : i32
    return %c0_i32, %c0_i32_0 : i32, i32
  }
  func.func @transform_3(%arg0: i32) -> (i32, i32) {
    %c0_i32 = arith.constant 0 : i32
    %c0_i32_0 = arith.constant 0 : i32
    return %arg0, %c0_i32 : i32, i32
  }
}

module attributes {stable_mosaic.version = 11 : i64} {
  func.func @_glu_block_kernel(%arg0: i32, %arg1: memref<16x16xf32, #tpu.memory_space<vmem>>, %arg2: memref<16x256xf32, #tpu.memory_space<vmem>>, %arg3: memref<1x256xf32, #tpu.memory_space<vmem>>, %arg4: memref<16x128xf32, #tpu.memory_space<vmem>>) attributes {dimension_semantics = [#tpu.dimension_semantics<parallel>], iteration_bounds = array<i64: 2>, scalar_prefetch = 0 : i64, scratch_operands = 0 : i64, tpu.core_type = #tpu.core_type<tc>, window_params = [{transform_indices = @transform_0, window_bounds = array<i64: 16, 16>}, {pipeline_mode = #tpu.pipeline_mode<synchronous>, transform_indices = @transform_1, window_bounds = array<i64: 16, 256>}, {pipeline_mode = #tpu.pipeline_mode<synchronous>, transform_indices = @transform_2, window_bounds = array<i64: 1, 256>}, {transform_indices = @transform_3, window_bounds = array<i64: 16, 128>}]} {
    %c0 = arith.constant 0 : index
    %c0_0 = arith.constant 0 : index
    %0 = vector.load %arg1[%c0, %c0_0] : memref<16x16xf32, #tpu.memory_space<vmem>>, vector<16x16xf32>
    %c0_1 = arith.constant 0 : index
    %c0_2 = arith.constant 0 : index
    %1 = vector.load %arg2[%c0_1, %c0_2] : memref<16x256xf32, #tpu.memory_space<vmem>>, vector<16x256xf32>
    %cst = arith.constant dense<0.000000e+00> : vector<16x256xf32>
    %2 = tpu.matmul %0, %1, %cst {dimension_numbers = #tpu.dot_dimension_numbers<[1], [0], [0], [1], [0, 0, 1, 1], [], []>} : vector<16x16xf32>, vector<16x256xf32>, vector<16x256xf32> -> vector<16x256xf32>
    %c0_3 = arith.constant 0 : index
    %c0_4 = arith.constant 0 : index
    %3 = vector.load %arg3[%c0_3, %c0_4] : memref<1x256xf32, #tpu.memory_space<vmem>>, vector<1x256xf32>
    %4 = vector.broadcast %3 : vector<1x256xf32> to vector<16x256xf32>
    %5 = arith.addf %2, %4 : vector<16x256xf32>
    %6 = vector.extract_strided_slice %5 {offsets = [0, 0], sizes = [16, 128], strides = [1, 1]} : vector<16x256xf32> to vector<16x128xf32>
    %7 = vector.extract_strided_slice %5 {offsets = [0, 128], sizes = [16, 128], strides = [1, 1]} : vector<16x256xf32> to vector<16x128xf32>
    %cst_5 = arith.constant 0.000000e+00 : f32
    %8 = vector.broadcast %cst_5 : f32 to vector<16x128xf32>
    %9 = arith.subf %8, %7 : vector<16x128xf32>
    %10 = math.exp %9 : vector<16x128xf32>
    %cst_6 = arith.constant 1.000000e+00 : f32
    %11 = vector.broadcast %cst_6 : f32 to vector<16x128xf32>
    %12 = arith.addf %11, %10 : vector<16x128xf32>
    %13 = tpu.reciprocal %12 : vector<16x128xf32> -> vector<16x128xf32>
    %14 = arith.mulf %6, %13 : vector<16x128xf32>
    %c0_7 = arith.constant 0 : index
    %c0_8 = arith.constant 0 : index
    %15 = vector.load %arg4[%c0_7, %c0_8] : memref<16x128xf32, #tpu.memory_space<vmem>>, vector<16x128xf32>
    tpu.vector_store %arg4[%c0_7, %c0_8], %14 {strides = array<i32>} : memref<16x128xf32, #tpu.memory_space<vmem>>, vector<16x128xf32>,
    return
  }
  func.func @transform_0(%arg0: i32) -> (i32, i32) {
    %c0_i32 = arith.constant 0 : i32
    %c0_i32_0 = arith.constant 0 : i32
    return %arg0, %c0_i32 : i32, i32
  }
  func.func @transform_1(%arg0: i32) -> (i32, i32) {
    %c0_i32 = arith.constant 0 : i32
    %c0_i32_0 = arith.constant 0 : i32
    %c0_i32_1 = arith.constant 0 : i32
    return %c0_i32, %c0_i32_0 : i32, i32
  }
  func.func @transform_2(%arg0: i32) -> (i32, i32) {
    %c0_i32 = arith.constant 0 : i32
    %c0_i32_0 = arith.constant 0 : i32
    %c0_i32_1 = arith.constant 0 : i32
    return %c0_i32, %c0_i32_0 : i32, i32
  }
  func.func @transform_3(%arg0: i32) -> (i32, i32) {
    %c0_i32 = arith.constant 0 : i32
    %c0_i32_0 = arith.constant 0 : i32
    return %arg0, %c0_i32 : i32, i32
  }
}

</mosaic_0001>

<bundles_post_ra>
// kernel: tpu_custom_call.1
= control target key start
LH: loop header
LB: loop body
LE: loop exit
PB: predicated region body
PF: predicated region fallthrough
CT: control target
= control target key end

     0   :  { %8 = vsyncpa [#allocation3], 0  ;;  %s692_s0 = inlined_call_operand.vmem [shape: f32[20,16], index: 0, kind: input, shape index: {}]   ;;  %s693_s1 = inlined_call_operand.vmem [shape: f32[16,256], index: 1, kind: input, shape index: {}]   ;;  %s694_s2 = inlined_call_operand.vmem [shape: f32[1,256], index: 2, kind: input, shape index: {}]   ;;  %s695_s3 = inlined_call_operand.hbm [shape: f32[20,128], index: 3, kind: output, shape index: {}]  }
   0x1   :  { %10 = vsyncpa [#allocation3 + $0x1], 0  ;;  %s556_s12 = smov 0   ;;  %s558_s13 = smov 0  }
   0x2   :  { %s560_s14 = smov 0   ;;  %s562_s15 = smov 0  }
   0x3 LB: > { %s577_s16 = sadd.s32 4294967295, %s530_s15   ;;  %s394_s17 = sadd.s32 4294967294, %s530_s15   ;;  %s530_s15 = sphi %s562_s15, %s701_s15   ;;  %s526_s14 = sphi %s560_s14, %s700_s14   ;;  %s522_s13 = sphi %s558_s13, %s699_s13   ;;  %s518_s12 = sphi %s556_s12, %s698_s12  }
   0x4   : > { %s581_s18 = sadd.s32 1, %s530_s15   ;;  %s91_s19 = sadd.s32 1, %s526_s14 }
   0x5   : > { %s88_s20 = ssub.s32 %s530_s15, %s581_s18  ;;  %p101_p0 = scmp.ne.s32.totalorder %s526_s14, %s522_s13 }
   0x6   : > { %p89_p1 = scmp.eq.s32.totalorder %s88_s20, 0  ;;  %p102_p2 = scmp.eq.s32.totalorder %s577_s16, 1 }
   0x7   : > { %p107_p3 = scmp.ne.s32.totalorder %s522_s13, %s518_s12  ;;  %p108_p4 = scmp.eq.s32.totalorder %s394_s17, 1 }
   0x8   : > { %s592_s21 = scalar_select %p89_p1, %s526_s14, %s91_s19  }
   0x9   : > { %p594_p5 = por %p102_p2, %p101_p0  ;;  %p598_p6 = por %p108_p4, %p107_p3 }
   0xa   : > { %p397_p7 = scmp.ge.s32.totalorder %s530_s15, 1  ;;  %p149_p8 = scmp.lt.s32.totalorder %s530_s15, 3 }
   0xc   : > { %p150_p9 = pnand %p397_p7, %p149_p8 }
   0xd   : > { %v199_v0 = vld [vmem:[%s693_s1 + $0x8] sm:$0xff] (!%p150_p9)  ;;  %v201_v1 = vld [vmem:[%s693_s1 + $0x18] sm:$0xff] (!%p150_p9)  ;;  %v198_v2 = vld [vmem:[%s693_s1] sm:$0xff] (!%p150_p9)  ;;  %s614_s30 = sshll.u32 (!%p150_p9), %s577_s16, 1  ;;  %v532_v5 = vmov (!%p150_p9), 0.0   ;;  %vm214_vm0 = vcmask (!%p150_p9), 130048   ;;  %v204_v9 = vlaneseq (!%p150_p9) }
   0xe   : > { %153 = sbr.rel (%p150_p9) target bundleno = 301 (0x12d), region = 32  ;;  %v413_v3 = vpack.c.bf16 (!%p150_p9), %v201_v1, %v199_v0  ;;  %v200_v4 = vld [vmem:[%s693_s1 + $0x10] sm:$0xff] (!%p150_p9)  ;;  %285 = vmatprep.mubr.f32.mxu0 (!%p150_p9), %v532_v5  ;;  %291 = vmatprep.mubr.f32.mxu1 (!%p150_p9), %v532_v5  ;;  %p182_p10 = scmp.lt.s32.totalorder (!%p150_p9), %s614_s30, 2  ;;  %v202_v12 = vld [vmem:[%s694_s2] sm:$0x3] (!%p150_p9) }
   0xf   : > { %v415_v6 = vpack.c.bf16 (!%p150_p9), %v200_v4, %v198_v2  ;;  %s174_s11 = sand.u32 (!%p150_p9), 1, %s522_s13   ;;  %v205_v10 = vshrl.u32 (!%p150_p9), %v204_v9, 7 }
  0x10   : > { %414 = vmatprep.subr.bf16.mxu0 (!%p150_p9), %v413_v3  ;;  %417 = vmatprep.subr.bf16.mxu1 (!%p150_p9), %v413_v3  ;;  %s398_s20 = sshll.u32 (!%p150_p9), %s174_s11, 4  ;;  %s632_s25 = scalar_lea.sflag (!%p150_p9), [#allocation3], %s174_s11 }
  0x11   : > { %416 = vmatpush1.bf16.msra.mxu0 (!%p150_p9), %v415_v6  ;;  %418 = vmatpush1.bf16.msra.mxu1 (!%p150_p9), %v415_v6  ;;  %v210_v11 = vsub.s32 (!%p150_p9), 1, %v205_v10  ;;  %v206_v28 = vsub.s32 (!%p150_p9), 0, %v205_v10  ;;  %s176_s24 = scalar_lea.vmem (!%p150_p9), [#allocation2], %s398_s20 }
  0x13   : > { %v211_v13 = vrot.slane (!%p150_p9), %v202_v12, %v210_v11  ;;  %v207_v29 = vrot.slane (!%p150_p9), %v202_v12, %v206_v28 }
  0x15   : > { %s183_s6 = scalar_select %p182_p10, %s614_s30, 2 }
  0x16   : > { %s321_s26 = ssub.s32 (%p594_p5), 3, %s614_s30 }
  0x17   : > { %s400_s7 = sshll.u32 %s183_s6, 3  ;;  %p322_p11 = scmp.lt.s32.totalorder (%p594_p5), %s321_s26, 2 }
  0x18   : > { %s185_s10 = scalar_lea.vmem %s692_s0, %s400_s7 }
  0x19   : > { %v196_v7 = vld [vmem:[%s185_s10] sm:$0xff]  ;;  %v197_v8 = vld [vmem:[%s185_s10 + $0x8] sm:$0xff] }
  0x1a   : > { %401 = vmatmul.mubr.msk.f32.vlgmr.msra.gmra.mrb[0].mxu0 %vm214_vm0, %v196_v7  ;;  %402 = vmatmul.mubr.msk.f32.vlgmr.msra.gmra.mrb[0].mxu1 %vm214_vm0, %v197_v8 }
  0xed   : > { %v287_v14 = vpop.f32.mrb[0].mxu0  ;;  %v293_v15 = vpop.f32.mrb[0].mxu1 }
  0xee   : > { %v289_v16 = vpop.f32.mrb[1].mxu0  ;;  %v295_v17 = vpop.f32.mrb[1].mxu1  ;;  %v288_v30 = vadd.f32 %v287_v14, %v207_v29  ;;  %v294_v32 = vadd.f32 %v293_v15, %v207_v29 }
  0xef   : > { %v290_v18 = vadd.f32 %v289_v16, %v211_v13  ;;  %v296_v19 = vadd.f32 %v295_v17, %v211_v13 }
  0xf1   : > { %v298_v20 = vsub.f32 0.0, %v290_v18  ;;  %v299_v21 = vsub.f32 0.0, %v296_v19 }
  0xf3   : > { %v300_v22 = vmul.f32 1.442695, %v298_v20  ;;  %v302_v23 = vmul.f32 1.442695, %v299_v21 }
  0xf5   : > { %460 = vpow2.f32 %v300_v22 }
  0xf6   : > { %462 = vpow2.f32 %v302_v23 }
  0xff   : > { %v461_v24 = vpop.eup %460 }
 0x100   : > { %v463_v25 = vpop.eup %462  ;;  %v304_v26 = vadd.f32 1.0, %v461_v24 }
 0x101   : > { %v305_v27 = vadd.f32 1.0, %v463_v25 }
 0x102   : > { %464 = vrcp.f32 %v304_v26 }
 0x103   : > { %466 = vrcp.f32 %v305_v27 }
 0x10a   : > { %319 = sbr.rel (!%p594_p5) target bundleno = 301 (0x12d), region = 36 }
 0x10c   : > { %v465_v31 = vpop.eup %464 }
 0x10d   : > { %v467_v33 = vpop.eup %466  ;;  %v308_v34 = vmul.f32 %v465_v31, %v288_v30 }
 0x10e   : > { %v309_v35 = vmul.f32 %v467_v33, %v294_v32 }
 0x10f   : > { %310 = vst [vmem:[%s176_s24] sm:$0xff] %v308_v34 }
 0x110   : > { %311 = vst [vmem:[%s176_s24 + $0x8] sm:$0xff] %v309_v35 }
 0x111   : > { %s703_s26 = smov (!%p322_p11, %s321_s26), 2 }
 0x112   : > { %s637_s27 = sshll.u32 %s703_s26, 7 }
 0x113   : > { %s326_s28 = ssub.s32 256, %s637_s27 }
 0x114   : > { %327 = vsyncadd %s632_s25, %s326_s28  ;;  %p406_p12 = scmp.ne.s32.totalorder %s637_s27, 0  ;;  %s412_s29 = sshll.u32 %s577_s16, 8 }
 0x115   : > { %s646_s22 = scalar_lea.hbm %s695_s3, %s412_s29  ;;  %s332_s6 = sshll.u32 %s176_s24, 4  ;;  %s648_s6 = int_to_ptr.vmem [resolvable:$true] %s332_s6 }
 0x116   : > { %s468_s30 = scalar_lea.vmem %s648_s6, %s637_s27  ;;  %s533_s7 = smov [#allocation2]  }
 0x117   : > { %p469_p13 = scmp.ne.s32.totalorder %s648_s6, %s468_s30  ;;  %s472_s8 = sshll.u32 %s533_s7, 4  ;;  %s473_s8 = int_to_ptr.vmem [resolvable:$false] %s472_s8 }
 0x118   : > { %s474_s16 = scalar_lea.vmem %s473_s8, 512  ;;  %p475_p2 = scmp.lt.s32.totalorder %s648_s6, %s473_s8 }
 0x119   : > { %p470_p0 = pnand %p469_p13, %p406_p12  ;;  %p476_p3 = scmp.lt.s32.totalorder %s474_s16, %s468_s30 }
 0x11b   : > { %p471_p1 = pneg %p470_p0  ;;  %p477_p4 = por %p476_p3, %p475_p2 }
 0x11d   : > { %p478_p5 = pnand %p477_p4, %p471_p1 }
 0x11f   : > { %481 = shalt.err (!%p478_p5)
}
 0x120   : > { %s482_s9 = scalar_lea.hbm %s646_s22, %s637_s27  ;;  %s486_s17 = scalar_lea.hbm %s695_s3, 384 }
 0x121   : > { %p483_p7 = scmp.ne.s32.totalorder %s646_s22, %s482_s9  ;;  %p487_p10 = scmp.lt.u32.totalorder %s646_s22, %s695_s3 }
 0x122   : > { %p488_p11 = scmp.lt.u32.totalorder %s486_s17, %s482_s9  ;;  %p490_p0 = scmp.lt.u32.totalorder %s482_s9, %s646_s22 }
 0x123   : > { %p484_p8 = pnand %p483_p7, %p406_p12 }
 0x124   : > { %p489_p13 = por %p488_p11, %p487_p10 }
 0x125   : > { %p485_p9 = pneg %p484_p8 }
 0x126   : > { %p491_p1 = por %p490_p0, %p489_p13 }
 0x128   : > { %p492_p2 = pnand %p491_p1, %p485_p9 }
 0x12a   : > { %495 = shalt.err (!%p492_p2)
}
 0x12b   : > { %s534_s24 = smov 128   ;;  %s535_s26 = smov 8  }
 0x12c   : > { %338 = dma.vmem_to_hbm [thread:$0]  (%p406_p12), %s648_s6, %s637_s27, %s646_s22, %s632_s25, %s534_s24, %s534_s24, %s535_s26  }
 0x12d PF: > { %p424_p3 = scmp.ge.s32.totalorder %s530_s15, 2  ;;  %s347_s28 = sand.u32 1, %s518_s12  }
 0x12e   : > { %s348_s29 = scalar_lea.sflag [#allocation3], %s347_s28 }
 0x12f   : > { %p421_p4 = pnand %p424_p3, %p598_p6 }
 0x131   : > { %513 = dma.done.wait (!%p421_p4), %s348_s29, 256  }
 0x132   : > { %515 = vsyncadd (!%p421_p4), %s348_s29, 4294967040  ;;  %p13_p5 = scmp.ge.s32.totalorder %s581_s18, 4   ;;  %s698_s12 = smov %s522_s13 }
 0x133   : > { %s699_s13 = smov %s526_s14  ;;  %s700_s14 = smov %s592_s21 }
 0x134   : > { %s701_s15 = smov %s581_s18  ;;  %15 = sbr.rel (!%p13_p5) target bundleno = 3 (0x3), region = 67 }
 0x13b   :  { %353 = vsyncpa [#allocation3], 1 }
 0x13c   :  { %355 = vsyncpa [#allocation3 + $0x1], 1 }

// kernel: tpu_custom_call.1
= control target key start
LH: loop header
LB: loop body
LE: loop exit
PB: predicated region body
PF: predicated region fallthrough
CT: control target
= control target key end

     0   :  { %8 = vsyncpa [#allocation3], 0  ;;  %s692_s0 = inlined_call_operand.vmem [shape: f32[20,16], index: 0, kind: input, shape index: {}]   ;;  %s693_s1 = inlined_call_operand.vmem [shape: f32[16,256], index: 1, kind: input, shape index: {}]   ;;  %s694_s2 = inlined_call_operand.vmem [shape: f32[1,256], index: 2, kind: input, shape index: {}]   ;;  %s695_s3 = inlined_call_operand.hbm [shape: f32[20,128], index: 3, kind: output, shape index: {}]  }
   0x1   :  { %10 = vsyncpa [#allocation3 + $0x1], 0  ;;  %s556_s12 = smov 0   ;;  %s558_s13 = smov 0  }
   0x2   :  { %s560_s14 = smov 0   ;;  %s562_s15 = smov 0  }
   0x3 LB: > { %s577_s16 = sadd.s32 4294967295, %s530_s15   ;;  %s394_s17 = sadd.s32 4294967294, %s530_s15   ;;  %s530_s15 = sphi %s562_s15, %s701_s15   ;;  %s526_s14 = sphi %s560_s14, %s700_s14   ;;  %s522_s13 = sphi %s558_s13, %s699_s13   ;;  %s518_s12 = sphi %s556_s12, %s698_s12  }
   0x4   : > { %s581_s18 = sadd.s32 1, %s530_s15   ;;  %s91_s19 = sadd.s32 1, %s526_s14 }
   0x5   : > { %s88_s20 = ssub.s32 %s530_s15, %s581_s18  ;;  %p101_p0 = scmp.ne.s32.totalorder %s526_s14, %s522_s13 }
   0x6   : > { %p89_p1 = scmp.eq.s32.totalorder %s88_s20, 0  ;;  %p102_p2 = scmp.eq.s32.totalorder %s577_s16, 1 }
   0x7   : > { %p107_p3 = scmp.ne.s32.totalorder %s522_s13, %s518_s12  ;;  %p108_p4 = scmp.eq.s32.totalorder %s394_s17, 1 }
   0x8   : > { %s592_s21 = scalar_select %p89_p1, %s526_s14, %s91_s19  }
   0x9   : > { %p594_p5 = por %p102_p2, %p101_p0  ;;  %p598_p6 = por %p108_p4, %p107_p3 }
   0xa   : > { %p397_p7 = scmp.ge.s32.totalorder %s530_s15, 1  ;;  %p149_p8 = scmp.lt.s32.totalorder %s530_s15, 3 }
   0xc   : > { %p150_p9 = pnand %p397_p7, %p149_p8 }
   0xd   : > { %v199_v0 = vld [vmem:[%s693_s1 + $0x8] sm:$0xff] (!%p150_p9)  ;;  %v201_v1 = vld [vmem:[%s693_s1 + $0x18] sm:$0xff] (!%p150_p9)  ;;  %v198_v2 = vld [vmem:[%s693_s1] sm:$0xff] (!%p150_p9)  ;;  %s614_s30 = sshll.u32 (!%p150_p9), %s577_s16, 1  ;;  %v532_v5 = vmov (!%p150_p9), 0.0   ;;  %vm214_vm0 = vcmask (!%p150_p9), 130048   ;;  %v204_v9 = vlaneseq (!%p150_p9) }
   0xe   : > { %153 = sbr.rel (%p150_p9) target bundleno = 301 (0x12d), region = 32  ;;  %v413_v3 = vpack.c.bf16 (!%p150_p9), %v201_v1, %v199_v0  ;;  %v200_v4 = vld [vmem:[%s693_s1 + $0x10] sm:$0xff] (!%p150_p9)  ;;  %285 = vmatprep.mubr.f32.mxu0 (!%p150_p9), %v532_v5  ;;  %291 = vmatprep.mubr.f32.mxu1 (!%p150_p9), %v532_v5  ;;  %p182_p10 = scmp.lt.s32.totalorder (!%p150_p9), %s614_s30, 2  ;;  %v202_v12 = vld [vmem:[%s694_s2] sm:$0x3] (!%p150_p9) }
   0xf   : > { %v415_v6 = vpack.c.bf16 (!%p150_p9), %v200_v4, %v198_v2  ;;  %s174_s11 = sand.u32 (!%p150_p9), 1, %s522_s13   ;;  %v205_v10 = vshrl.u32 (!%p150_p9), %v204_v9, 7 }
  0x10   : > { %414 = vmatprep.subr.bf16.mxu0 (!%p150_p9), %v413_v3  ;;  %417 = vmatprep.subr.bf16.mxu1 (!%p150_p9), %v413_v3  ;;  %s398_s20 = sshll.u32 (!%p150_p9), %s174_s11, 4  ;;  %s632_s25 = scalar_lea.sflag (!%p150_p9), [#allocation3], %s174_s11 }
  0x11   : > { %416 = vmatpush1.bf16.msra.mxu0 (!%p150_p9), %v415_v6  ;;  %418 = vmatpush1.bf16.msra.mxu1 (!%p150_p9), %v415_v6  ;;  %v210_v11 = vsub.s32 (!%p150_p9), 1, %v205_v10  ;;  %v206_v28 = vsub.s32 (!%p150_p9), 0, %v205_v10  ;;  %s176_s24 = scalar_lea.vmem (!%p150_p9), [#allocation2], %s398_s20 }
  0x13   : > { %v211_v13 = vrot.slane (!%p150_p9), %v202_v12, %v210_v11  ;;  %v207_v29 = vrot.slane (!%p150_p9), %v202_v12, %v206_v28 }
  0x15   : > { %s183_s6 = scalar_select %p182_p10, %s614_s30, 2 }
  0x16   : > { %s321_s26 = ssub.s32 (%p594_p5), 3, %s614_s30 }
  0x17   : > { %s400_s7 = sshll.u32 %s183_s6, 3  ;;  %p322_p11 = scmp.lt.s32.totalorder (%p594_p5), %s321_s26, 2 }
  0x18   : > { %s185_s10 = scalar_lea.vmem %s692_s0, %s400_s7 }
  0x19   : > { %v196_v7 = vld [vmem:[%s185_s10] sm:$0xff]  ;;  %v197_v8 = vld [vmem:[%s185_s10 + $0x8] sm:$0xff] }
  0x1a   : > { %401 = vmatmul.mubr.msk.f32.vlgmr.msra.gmra.mrb[0].mxu0 %vm214_vm0, %v196_v7  ;;  %402 = vmatmul.mubr.msk.f32.vlgmr.msra.gmra.mrb[0].mxu1 %vm214_vm0, %v197_v8 }
  0xed   : > { %v287_v14 = vpop.f32.mrb[0].mxu0  ;;  %v293_v15 = vpop.f32.mrb[0].mxu1 }
  0xee   : > { %v289_v16 = vpop.f32.mrb[1].mxu0  ;;  %v295_v17 = vpop.f32.mrb[1].mxu1  ;;  %v288_v30 = vadd.f32 %v287_v14, %v207_v29  ;;  %v294_v32 = vadd.f32 %v293_v15, %v207_v29 }
  0xef   : > { %v290_v18 = vadd.f32 %v289_v16, %v211_v13  ;;  %v296_v19 = vadd.f32 %v295_v17, %v211_v13 }
  0xf1   : > { %v298_v20 = vsub.f32 0.0, %v290_v18  ;;  %v299_v21 = vsub.f32 0.0, %v296_v19 }
  0xf3   : > { %v300_v22 = vmul.f32 1.442695, %v298_v20  ;;  %v302_v23 = vmul.f32 1.442695, %v299_v21 }
  0xf5   : > { %460 = vpow2.f32 %v300_v22 }
  0xf6   : > { %462 = vpow2.f32 %v302_v23 }
  0xff   : > { %v461_v24 = vpop.eup %460 }
 0x100   : > { %v463_v25 = vpop.eup %462  ;;  %v304_v26 = vadd.f32 1.0, %v461_v24 }
 0x101   : > { %v305_v27 = vadd.f32 1.0, %v463_v25 }
 0x102   : > { %464 = vrcp.f32 %v304_v26 }
 0x103   : > { %466 = vrcp.f32 %v305_v27 }
 0x10a   : > { %319 = sbr.rel (!%p594_p5) target bundleno = 301 (0x12d), region = 36 }
 0x10c   : > { %v465_v31 = vpop.eup %464 }
 0x10d   : > { %v467_v33 = vpop.eup %466  ;;  %v308_v34 = vmul.f32 %v465_v31, %v288_v30 }
 0x10e   : > { %v309_v35 = vmul.f32 %v467_v33, %v294_v32 }
 0x10f   : > { %310 = vst [vmem:[%s176_s24] sm:$0xff] %v308_v34 }
 0x110   : > { %311 = vst [vmem:[%s176_s24 + $0x8] sm:$0xff] %v309_v35 }
 0x111   : > { %s703_s26 = smov (!%p322_p11, %s321_s26), 2 }
 0x112   : > { %s637_s27 = sshll.u32 %s703_s26, 7 }
 0x113   : > { %s326_s28 = ssub.s32 256, %s637_s27 }
 0x114   : > { %327 = vsyncadd %s632_s25, %s326_s28  ;;  %p406_p12 = scmp.ne.s32.totalorder %s637_s27, 0  ;;  %s412_s29 = sshll.u32 %s577_s16, 8 }
 0x115   : > { %s646_s22 = scalar_lea.hbm %s695_s3, %s412_s29  ;;  %s332_s6 = sshll.u32 %s176_s24, 4  ;;  %s648_s6 = int_to_ptr.vmem [resolvable:$true] %s332_s6 }
 0x116   : > { %s468_s30 = scalar_lea.vmem %s648_s6, %s637_s27  ;;  %s533_s7 = smov [#allocation2]  }
 0x117   : > { %p469_p13 = scmp.ne.s32.totalorder %s648_s6, %s468_s30  ;;  %s472_s8 = sshll.u32 %s533_s7, 4  ;;  %s473_s8 = int_to_ptr.vmem [resolvable:$false] %s472_s8 }
 0x118   : > { %s474_s16 = scalar_lea.vmem %s473_s8, 512  ;;  %p475_p2 = scmp.lt.s32.totalorder %s648_s6, %s473_s8 }
 0x119   : > { %p470_p0 = pnand %p469_p13, %p406_p12  ;;  %p476_p3 = scmp.lt.s32.totalorder %s474_s16, %s468_s30 }
 0x11b   : > { %p471_p1 = pneg %p470_p0  ;;  %p477_p4 = por %p476_p3, %p475_p2 }
 0x11d   : > { %p478_p5 = pnand %p477_p4, %p471_p1 }
 0x11f   : > { %481 = shalt.err (!%p478_p5)
}
 0x120   : > { %s482_s9 = scalar_lea.hbm %s646_s22, %s637_s27  ;;  %s486_s17 = scalar_lea.hbm %s695_s3, 384 }
 0x121   : > { %p483_p7 = scmp.ne.s32.totalorder %s646_s22, %s482_s9  ;;  %p487_p10 = scmp.lt.u32.totalorder %s646_s22, %s695_s3 }
 0x122   : > { %p488_p11 = scmp.lt.u32.totalorder %s486_s17, %s482_s9  ;;  %p490_p0 = scmp.lt.u32.totalorder %s482_s9, %s646_s22 }
 0x123   : > { %p484_p8 = pnand %p483_p7, %p406_p12 }
 0x124   : > { %p489_p13 = por %p488_p11, %p487_p10 }
 0x125   : > { %p485_p9 = pneg %p484_p8 }
 0x126   : > { %p491_p1 = por %p490_p0, %p489_p13 }
 0x128   : > { %p492_p2 = pnand %p491_p1, %p485_p9 }
 0x12a   : > { %495 = shalt.err (!%p492_p2)
}
 0x12b   : > { %s534_s24 = smov 128   ;;  %s535_s26 = smov 8  }
 0x12c   : > { %338 = dma.vmem_to_hbm [thread:$0]  (%p406_p12), %s648_s6, %s637_s27, %s646_s22, %s632_s25, %s534_s24, %s534_s24, %s535_s26  }
 0x12d PF: > { %p424_p3 = scmp.ge.s32.totalorder %s530_s15, 2  ;;  %s347_s28 = sand.u32 1, %s518_s12  }
 0x12e   : > { %s348_s29 = scalar_lea.sflag [#allocation3], %s347_s28 }
 0x12f   : > { %p421_p4 = pnand %p424_p3, %p598_p6 }
 0x131   : > { %513 = dma.done.wait (!%p421_p4), %s348_s29, 256  }
 0x132   : > { %515 = vsyncadd (!%p421_p4), %s348_s29, 4294967040  ;;  %p13_p5 = scmp.ge.s32.totalorder %s581_s18, 4   ;;  %s698_s12 = smov %s522_s13 }
 0x133   : > { %s699_s13 = smov %s526_s14  ;;  %s700_s14 = smov %s592_s21 }
 0x134   : > { %s701_s15 = smov %s581_s18  ;;  %15 = sbr.rel (!%p13_p5) target bundleno = 3 (0x3), region = 67 }
 0x13b   :  { %353 = vsyncpa [#allocation3], 1 }
 0x13c   :  { %355 = vsyncpa [#allocation3 + $0x1], 1 }

</bundles_post_ra>
